<compile_context>
chip_gen: v7x
topology: tpu7x:2x2x1
jax: 0.10.0
libtpu: 0.0.40
codegen_flags: <defaults>
</compile_context>

<pallas_src>
import functools

import jax
import jax.numpy as jnp
from jax.experimental import pallas as pl
from jax.experimental.pallas import tpu as pltpu

_MAX_CHUNKS = 4              # a handful of big DMAs in flight is plenty
_MIN_CHUNK_BYTES = 1 << 20   # don't bother chunking below ~1 MiB per chunk


def _plan_chunks(shape, itemsize):
    """Static (start, size) chunks along the leading axis, or None for a single
    whole-array DMA."""
    if len(shape) == 0 or shape[0] < 2:
        return None
    nbytes = itemsize
    for d in shape:
        nbytes *= d
    n = min(_MAX_CHUNKS, shape[0], max(1, nbytes // _MIN_CHUNK_BYTES))
    if n <= 1:
        return None
    base, rem = divmod(shape[0], n)
    chunks, start = [], 0
    for c in range(n):
        size = base + (1 if c < rem else 0)
        chunks.append((start, size))
        start += size
    return tuple(chunks)


def _make_clone_kernel(chunks):
    """Kernel issuing HBM->HBM DMA(s); all starts before any wait."""

    def kernel(x_hbm, o_hbm, sem):
        if chunks is None:
            cp = pltpu.make_async_copy(x_hbm, o_hbm, sem.at[0])
            cp.start()
            cp.wait()
        else:
            copies = []
            for c, (start, size) in enumerate(chunks):  # static Python loop
                cp = pltpu.make_async_copy(
                    x_hbm.at[pl.ds(start, size)],
                    o_hbm.at[pl.ds(start, size)],
                    sem.at[c],
                )
                cp.start()
                copies.append(cp)
            for cp in copies:
                cp.wait()

    return kernel


@functools.lru_cache(maxsize=None)
def _build_clone(shape, dtype_name):
    dtype = jnp.dtype(dtype_name)
    chunks = _plan_chunks(shape, dtype.itemsize)
    n_sem = 1 if chunks is None else len(chunks)
    nbytes = dtype.itemsize
    for d in shape:
        nbytes *= d

    clone = pl.pallas_call(
        _make_clone_kernel(chunks),
        out_shape=jax.ShapeDtypeStruct(shape, dtype),
        # Raw HBM refs on both sides: no BlockSpec tiling, no VMEM staging.
        in_specs=[pl.BlockSpec(memory_space=pl.ANY)],
        out_specs=pl.BlockSpec(memory_space=pl.ANY),
        scratch_shapes=[pltpu.SemaphoreType.DMA((n_sem,))],
        cost_estimate=pl.CostEstimate(
            flops=0, transcendentals=0, bytes_accessed=2 * nbytes
        ),
    )
    return jax.jit(clone)


def _pallas_clone(x):
    return _build_clone(tuple(x.shape), jnp.dtype(x.dtype).name)(x)


def activation_cache_forward(x):
    """Returns (y, cache).

    y is x itself (immutable passthrough, zero HBM traffic); cache is a
    physically distinct HBM buffer produced by a pure HBM->HBM DMA kernel.
    (Under JAX value semantics caching `x` itself would already match
    detach().clone(); the kernel is kept so the cache is an independent
    buffer, e.g. safe under donation / buffer reuse.)
    """
    if x.ndim == 0 or x.size == 0:
        # Nothing worth DMA-ing; `x` is immutable so it IS a detached clone.
        return x, x
    return x, _pallas_clone(x)


class ActivationCache:
    """JAX/Pallas port of latent_at/fit_pca.py::ActivationCache (no parameters)."""

    def __init__(self):
        self.activation_cache = None

    def __call__(self, x):
        y, cache = activation_cache_forward(x)
        self.activation_cache = cache
        return y

    def get_cache(self):
        return self.activation_cache

    def clear_cache(self):
        # Matches the PyTorch module (sets [] even though __init__ uses None).
        self.activation_cache = []


if __name__ == "__main__":
    key = jax.random.PRNGKey(0)

    # 1) Small NCHW-style activation (single whole-array DMA path).
    x = jax.random.normal(key, (2, 4, 16, 16), dtype=jnp.float32)
    mod = ActivationCache()
    y = mod(x)
    cache = jax.block_until_ready(mod.get_cache())
    y = jax.block_until_ready(y)
    assert y.shape == x.shape and y.dtype == x.dtype
    assert cache.shape == x.shape and cache.dtype == x.dtype
    assert bool(jnp.all(y == x)) and bool(jnp.all(cache == x))

    # 2) Ragged (non-multiple-of-128) bf16 input — no pad/slice passes needed.
    x2 = jax.random.normal(jax.random.PRNGKey(1), (3, 5, 7), dtype=jnp.bfloat16)
    y2 = mod(x2)
    c2 = jax.block_until_ready(mod.get_cache())
    assert c2.shape == x2.shape and c2.dtype == x2.dtype
    assert bool(jnp.all(c2 == x2)) and bool(jnp.all(y2 == x2))

    # 3) Larger activation to exercise the chunked multi-DMA path (4 chunks).
    x3 = jax.random.normal(jax.random.PRNGKey(2), (8, 512, 512), dtype=jnp.float32)
    y3 = mod(x3)
    c3 = jax.block_until_ready(mod.get_cache())
    assert bool(jnp.all(c3 == x3)) and bool(jnp.all(y3 == x3))

    print("KERNEL_OK")
</pallas_src>

<mosaic_0001>
module attributes {stable_mosaic.version = 11 : i64} {
  func.func @kernel(%arg0: memref<2x4x16x16xf32, #tpu.memory_space<any>>, %arg1: memref<2x4x16x16xf32, #tpu.memory_space<any>>, %arg2: memref<1x!tpu.dma_semaphore, #tpu.memory_space<semaphore_mem>>) attributes {dimension_semantics = [], scalar_prefetch = 0 : i64, scratch_operands = 1 : i64, tpu.core_type = #tpu.core_type<tc>} {
    %c0_i32 = arith.constant 0 : i32
    %0 = tpu.memref_slice %arg2[%c0_i32] : memref<1x!tpu.dma_semaphore, #tpu.memory_space<semaphore_mem>> -> memref<1x!tpu.dma_semaphore, #tpu.memory_space<semaphore_mem>>
    %1 = tpu.memref_squeeze %0 : memref<1x!tpu.dma_semaphore, #tpu.memory_space<semaphore_mem>> -> memref<!tpu.dma_semaphore, #tpu.memory_space<semaphore_mem>>
    tpu.enqueue_dma source(%arg0 : memref<2x4x16x16xf32, #tpu.memory_space<any>>) target(%arg1 : memref<2x4x16x16xf32, #tpu.memory_space<any>>) target_semaphore(%1 : memref<!tpu.dma_semaphore, #tpu.memory_space<semaphore_mem>>)
    %c0_i32_0 = arith.constant 0 : i32
    %2 = tpu.memref_slice %arg2[%c0_i32_0] : memref<1x!tpu.dma_semaphore, #tpu.memory_space<semaphore_mem>> -> memref<1x!tpu.dma_semaphore, #tpu.memory_space<semaphore_mem>>
    %3 = tpu.memref_squeeze %2 : memref<1x!tpu.dma_semaphore, #tpu.memory_space<semaphore_mem>> -> memref<!tpu.dma_semaphore, #tpu.memory_space<semaphore_mem>>
    tpu.wait_dma2 semaphore(%3 : memref<!tpu.dma_semaphore, #tpu.memory_space<semaphore_mem>>) src(%arg0 : memref<2x4x16x16xf32, #tpu.memory_space<any>>) dst(%arg1 : memref<2x4x16x16xf32, #tpu.memory_space<any>>)
    return
  }
}

</mosaic_0001>

<bundles_post_ra>
// kernel: tpu_custom_call.1
= control target key start
LH: loop header
LB: loop body
LE: loop exit
PB: predicated region body
PF: predicated region fallthrough
CT: control target
= control target key end

     0   :  { %s36_s6 = smov [#allocation2]   ;;  %s37_s7 = smov [#allocation3]   ;;  %s55_s0 = inlined_call_operand.hbm [shape: f32[2,4,16,16], index: 0, kind: input, shape index: {}]   ;;  %s56_s1 = inlined_call_operand.hbm [shape: f32[2,4,16,16], index: 1, kind: output, shape index: {}]  }
   0x1   :  { %s38_s8 = smov 0  }
   0x2   :  { %18 = dma.general %s55_s0, 2048, %s56_s1, %s36_s6, %s37_s7, [#allocation4], %s38_s8, 0  }
   0x3   :  { %34 = dma.done.wait [#allocation2], 2048 }
   0x4   :  { %35 = vsyncadd [#allocation2], 4294965248 }
   0x5   :  { %24 = vsyncmov [#allocation2] }
   0x8   :  { %s25_s13 = vpop.sfrf %24 }
   0x9   :  { %p30_p0 = scmp.ne.s32.totalorder %s25_s13, 0 }
   0xb   :  { %29 = shalt.err (%p30_p0)  }

</bundles_post_ra>
